<compile_context>
chip_gen: v7x
topology: tpu7x:2x2x1
jax: 0.10.0
libtpu: 0.0.40
codegen_flags: <defaults>
</compile_context>

<pallas_src>
import functools

import jax
import jax.numpy as jnp
import numpy as np
from jax.experimental import pallas as pl
from jax.experimental.pallas import tpu as pltpu


def _round_up(x, m):
    return ((x + m - 1) // m) * m


def _conv_same_kernel(x_ref, w_ref, b_ref, o_ref, col_ref, *, k, Wp, Cin_pad):
    """One (image, row-tile, Cout-tile) grid step.

    x_ref:   (1, 1, Cin_pad, WIN)   bf16 halo window of the padded image
    w_ref:   (co_tile, KK)          bf16 im2col-ordered weights
    b_ref:   (co_tile, 1)           f32 bias
    o_ref:   (1, co_tile, L_pad)    bf16 output tile (lane dim = L_pad)
    col_ref: (KK, L_pad)            bf16 im2col scratch, reused across co tiles
    """
    L_pad = col_ref.shape[1]

    # Build the im2col matrix once per (image, row-tile).  It only depends on
    # the input window, so it is reused for every Cout tile (the co grid axis
    # is innermost and marked "arbitrary" -> sequential on one core).
    @pl.when(pl.program_id(2) == 0)
    def _build_col():
        for kh in range(k):
            for kw in range(k):
                tap = kh * k + kw
                off = kh * Wp + kw            # static, contiguous lane slab
                col_ref[tap * Cin_pad:(tap + 1) * Cin_pad, :] = (
                    x_ref[0, 0, :, off:off + L_pad])

    # Single MXU contraction per tile: K = k*k*Cin_pad folds all taps together.
    acc = jnp.dot(w_ref[...], col_ref[...],
                  preferred_element_type=jnp.float32)      # (co_tile, L_pad) f32
    o_ref[0] = (acc + b_ref[...]).astype(o_ref.dtype)


def conv2d_same(x_nchw, weight_oihw, bias, kernel_size, *,
                co_tile_max=128, out_store_dtype=jnp.bfloat16):
    """Forward of Conv2dSame: ReflectionPad2d((ka, kb, ka, kb)) -> Conv2d(k, bias)."""
    k = kernel_size
    ka = k // 2
    kb = ka - 1 if k % 2 == 0 else ka

    N, Cin, H, W = x_nchw.shape
    Cout = weight_oihw.shape[0]
    in_dtype = x_nchw.dtype

    Hp, Wp = H + ka + kb, W + ka + kb

    # Cin padded to a sublane multiple so each im2col slab write starts aligned.
    Cin_pad = _round_up(Cin, 8)
    KK = k * k * Cin_pad

    out_bytes = np.dtype(out_store_dtype).itemsize
    # Cout is the SUBLANE dim of the output block -> only needs 16 (bf16) / 8
    # (f32) granularity; lane density comes from the pixel axis.
    sub = 16 if out_bytes == 2 else 8
    if Cout <= co_tile_max:
        Cout_p = _round_up(Cout, sub)
        co_tile = Cout_p
    else:
        co_tile = co_tile_max
        Cout_p = _round_up(Cout, co_tile)
    n_co = Cout_p // co_tile

    # ---- per-generation VMEM-budgeted row-tile size -------------------------
    try:
        vmem_cap = int(pltpu.get_tpu_info().vmem_capacity_bytes)
    except Exception:                       # conservative fallback (v7x-sized)
        vmem_cap = 64 * 1024 * 1024
    vmem_limit = int(vmem_cap * 0.70)       # leave compiler/internal headroom
    tile_budget = int(vmem_limit * 0.85)

    def footprint(T):
        L_pad = _round_up(T * Wp, 128)
        win = (k - 1) * (Wp + 1) + L_pad
        b = KK * L_pad * 2                           # col scratch (single buffer)
        b += 2 * co_tile * L_pad * out_bytes         # output (double buffered)
        b += 2 * Cin_pad * win * 2                   # input halo window (dbl buf)
        b += 2 * (co_tile * KK * 2 + co_tile * 4)    # weights + bias (dbl buf)
        return b

    T = 1
    for cand in range(1, H + 1):
        if footprint(cand) <= tile_budget:
            T = cand
        else:
            break
    # TODO(synk): if even footprint(1) > tile_budget (huge W*Cin) add width
    #             tiling; currently we fall back to T=1 and rely on headroom.

    H_t = _round_up(H, T)
    n_row = H_t // T
    L_pad = _round_up(T * Wp, 128)
    WIN = (k - 1) * (Wp + 1) + L_pad
    S_all = (n_row - 1) * T * Wp + WIN       # flat length the last tile needs

    # ---- wrapper-side data prep (cast to bf16 BEFORE any padding) -----------
    xb = x_nchw.astype(jnp.bfloat16)
    xb = jnp.pad(xb, ((0, 0), (0, Cin_pad - Cin), (0, 0), (0, 0)))
    xp = jnp.pad(xb, ((0, 0), (0, 0), (ka, kb), (ka, kb)), mode="reflect")
    xf = xp.reshape(N, Cin_pad, Hp * Wp)
    xf = jnp.pad(xf, ((0, 0), (0, 0), (0, S_all - Hp * Wp)))
    # Per-row-tile halo windows of the flattened padded image.
    x_win = jnp.stack(
        [jax.lax.slice_in_dim(xf, r * T * Wp, r * T * Wp + WIN, axis=2)
         for r in range(n_row)], axis=1)              # (N, n_row, Cin_pad, WIN)

    # Weights: (Cout, Cin, k, k) -> (Cout, k, k, Cin_pad) -> (Cout_p, KK);
    # im2col row order (kh, kw, cin) matches the col scratch layout.
    w = jnp.transpose(weight_oihw.astype(jnp.bfloat16), (0, 2, 3, 1))
    w = jnp.pad(w, ((0, Cout_p - Cout), (0, 0), (0, 0), (0, Cin_pad - Cin)))
    w2d = w.reshape(Cout_p, KK)
    b2 = jnp.pad(bias.astype(jnp.float32), (0, Cout_p - Cout)).reshape(Cout_p, 1)

    grid = (N, n_row, n_co)
    out = pl.pallas_call(
        functools.partial(_conv_same_kernel, k=k, Wp=Wp, Cin_pad=Cin_pad),
        out_shape=jax.ShapeDtypeStruct((N, Cout_p, n_row * L_pad), out_store_dtype),
        grid_spec=pltpu.PrefetchScalarGridSpec(
            num_scalar_prefetch=0,
            grid=grid,
            in_specs=[
                # Halo window: block index only changes with (n, r), so it stays
                # resident (no re-DMA) across the inner Cout-tile loop.
                pl.BlockSpec((1, 1, Cin_pad, WIN), lambda n, r, co: (n, r, 0, 0)),
                pl.BlockSpec((co_tile, KK), lambda n, r, co: (co, 0)),
                pl.BlockSpec((co_tile, 1), lambda n, r, co: (co, 0)),
            ],
            out_specs=pl.BlockSpec((1, co_tile, L_pad),
                                   lambda n, r, co: (n, co, r)),
            scratch_shapes=[pltpu.VMEM((KK, L_pad), jnp.bfloat16)],
        ),
        compiler_params=pltpu.CompilerParams(
            # batch / row tiles are independent (megacore sharding); the Cout
            # axis must stay sequential so the im2col scratch built at co == 0
            # is valid for the later Cout tiles of the same (n, r).
            dimension_semantics=("parallel", "parallel", "arbitrary"),
            vmem_limit_bytes=vmem_limit,
        ),
    )(x_win, w2d, b2)

    # Drop wrap/padding lanes, padded rows and padded channels -> NCHW.
    out = out.reshape(N, Cout_p, n_row, L_pad)[:, :Cout, :, :T * Wp]
    out = out.reshape(N, Cout, H_t, Wp)[:, :, :H, :W]
    return out.astype(in_dtype)


def _reference(x_nchw, weight_oihw, bias, kernel_size):
    """lax.conv reference on the same bf16-rounded operands (f32 accumulation)."""
    k = kernel_size
    ka = k // 2
    kb = ka - 1 if k % 2 == 0 else ka
    xp = jnp.pad(x_nchw, ((0, 0), (0, 0), (ka, kb), (ka, kb)), mode="reflect")
    xp = xp.astype(jnp.bfloat16).astype(jnp.float32)
    w = weight_oihw.astype(jnp.bfloat16).astype(jnp.float32)
    out = jax.lax.conv_general_dilated(
        xp, w, window_strides=(1, 1), padding="VALID",
        dimension_numbers=("NCHW", "OIHW", "NCHW"),
        preferred_element_type=jnp.float32,
        precision=jax.lax.Precision.HIGHEST,
    )
    return out + bias.reshape(1, -1, 1, 1)


if __name__ == "__main__":
    key = jax.random.PRNGKey(0)
    k_x, k_w, k_b = jax.random.split(key, 3)

    N, Cin, H, W = 2, 4, 16, 16
    Cout, ksize = 8, 3

    x = jax.random.normal(k_x, (N, Cin, H, W), dtype=jnp.float32)
    # Deterministic synthetic params (shapes match nn.Conv2d(Cin, Cout, ksize)).
    weight = jax.random.normal(k_w, (Cout, Cin, ksize, ksize), dtype=jnp.float32) * 0.1
    bias = jax.random.normal(k_b, (Cout,), dtype=jnp.float32) * 0.1

    out = jax.block_until_ready(conv2d_same(x, weight, bias, ksize))
    ref = jax.block_until_ready(_reference(x, weight, bias, ksize))

    assert out.shape == (N, Cout, H, W), out.shape
    # Kernel uses bf16 MXU operands with f32 accumulation and (per perf review)
    # stores the output in bf16; the reference keeps f32 after the identically
    # bf16-rounded operands, so the tolerance covers one bf16 output rounding.
    np.testing.assert_allclose(np.asarray(out), np.asarray(ref), rtol=2e-2, atol=2e-2)

    print("KERNEL_OK")
</pallas_src>

<mosaic_0001>
module attributes {stable_mosaic.version = 11 : i64} {
  func.func @_conv_same_kernel(%arg0: i32, %arg1: i32, %arg2: i32, %arg3: memref<1x1x8x422xbf16, #tpu.memory_space<vmem>>, %arg4: memref<16x72xbf16, #tpu.memory_space<vmem>>, %arg5: memref<16x1xf32, #tpu.memory_space<vmem>>, %arg6: memref<1x16x384xbf16, #tpu.memory_space<vmem>>, %arg7: memref<72x384xbf16, #tpu.memory_space<vmem>>) attributes {dimension_semantics = [#tpu.dimension_semantics<parallel>, #tpu.dimension_semantics<parallel>, #tpu.dimension_semantics<arbitrary>], iteration_bounds = array<i64: 2, 1, 1>, scalar_prefetch = 0 : i64, scratch_operands = 1 : i64, tpu.core_type = #tpu.core_type<tc>, window_params = [{transform_indices = @transform_0, window_bounds = array<i64: 1, 1, 8, 422>}, {transform_indices = @transform_1, window_bounds = array<i64: 16, 72>}, {transform_indices = @transform_2, window_bounds = array<i64: 16, 1>}, {transform_indices = @transform_3, window_bounds = array<i64: 1, 16, 384>}]} {
    %c0_i32 = arith.constant 0 : i32
    %0 = arith.cmpi eq, %arg2, %c0_i32 : i32
    %1 = arith.extui %0 : i1 to i32
    %c0_i32_0 = arith.constant 0 : i32
    %2 = arith.cmpi ne, %1, %c0_i32_0 : i32
    scf.if %2 {
      %c0_9 = arith.constant 0 : index
      %c0_10 = arith.constant 0 : index
      %c0_11 = arith.constant 0 : index
      %c0_12 = arith.constant 0 : index
      %13 = vector.load %arg3[%c0_9, %c0_10, %c0_11, %c0_12] : memref<1x1x8x422xbf16, #tpu.memory_space<vmem>>, vector<1x1x8x384xbf16>
      %14 = vector.shape_cast %13 : vector<1x1x8x384xbf16> to vector<8x384xbf16>
      %c0_13 = arith.constant 0 : index
      %c0_14 = arith.constant 0 : index
      %15 = vector.load %arg7[%c0_13, %c0_14] : memref<72x384xbf16, #tpu.memory_space<vmem>>, vector<8x384xbf16>
      tpu.vector_store %arg7[%c0_13, %c0_14], %14 {strides = array<i32>} : memref<72x384xbf16, #tpu.memory_space<vmem>>, vector<8x384xbf16>,
      %c0_15 = arith.constant 0 : index
      %c0_16 = arith.constant 0 : index
      %c0_17 = arith.constant 0 : index
      %c1 = arith.constant 1 : index
      %16 = vector.load %arg3[%c0_15, %c0_16, %c0_17, %c1] : memref<1x1x8x422xbf16, #tpu.memory_space<vmem>>, vector<1x1x8x384xbf16>
      %17 = vector.shape_cast %16 : vector<1x1x8x384xbf16> to vector<8x384xbf16>
      %c8 = arith.constant 8 : index
      %c0_18 = arith.constant 0 : index
      %18 = vector.load %arg7[%c8, %c0_18] : memref<72x384xbf16, #tpu.memory_space<vmem>>, vector<8x384xbf16>
      tpu.vector_store %arg7[%c8, %c0_18], %17 {strides = array<i32>} : memref<72x384xbf16, #tpu.memory_space<vmem>>, vector<8x384xbf16>,
      %c0_19 = arith.constant 0 : index
      %c0_20 = arith.constant 0 : index
      %c0_21 = arith.constant 0 : index
      %c2 = arith.constant 2 : index
      %19 = vector.load %arg3[%c0_19, %c0_20, %c0_21, %c2] : memref<1x1x8x422xbf16, #tpu.memory_space<vmem>>, vector<1x1x8x384xbf16>
      %20 = vector.shape_cast %19 : vector<1x1x8x384xbf16> to vector<8x384xbf16>
      %c16 = arith.constant 16 : index
      %c0_22 = arith.constant 0 : index
      %21 = vector.load %arg7[%c16, %c0_22] : memref<72x384xbf16, #tpu.memory_space<vmem>>, vector<8x384xbf16>
      tpu.vector_store %arg7[%c16, %c0_22], %20 {strides = array<i32>} : memref<72x384xbf16, #tpu.memory_space<vmem>>, vector<8x384xbf16>,
      %c0_23 = arith.constant 0 : index
      %c0_24 = arith.constant 0 : index
      %c0_25 = arith.constant 0 : index
      %c18 = arith.constant 18 : index
      %22 = vector.load %arg3[%c0_23, %c0_24, %c0_25, %c18] : memref<1x1x8x422xbf16, #tpu.memory_space<vmem>>, vector<1x1x8x384xbf16>
      %23 = vector.shape_cast %22 : vector<1x1x8x384xbf16> to vector<8x384xbf16>
      %c24 = arith.constant 24 : index
      %c0_26 = arith.constant 0 : index
      %24 = vector.load %arg7[%c24, %c0_26] : memref<72x384xbf16, #tpu.memory_space<vmem>>, vector<8x384xbf16>
      tpu.vector_store %arg7[%c24, %c0_26], %23 {strides = array<i32>} : memref<72x384xbf16, #tpu.memory_space<vmem>>, vector<8x384xbf16>,
      %c0_27 = arith.constant 0 : index
      %c0_28 = arith.constant 0 : index
      %c0_29 = arith.constant 0 : index
      %c19 = arith.constant 19 : index
      %25 = vector.load %arg3[%c0_27, %c0_28, %c0_29, %c19] : memref<1x1x8x422xbf16, #tpu.memory_space<vmem>>, vector<1x1x8x384xbf16>
      %26 = vector.shape_cast %25 : vector<1x1x8x384xbf16> to vector<8x384xbf16>
      %c32 = arith.constant 32 : index
      %c0_30 = arith.constant 0 : index
      %27 = vector.load %arg7[%c32, %c0_30] : memref<72x384xbf16, #tpu.memory_space<vmem>>, vector<8x384xbf16>
      tpu.vector_store %arg7[%c32, %c0_30], %26 {strides = array<i32>} : memref<72x384xbf16, #tpu.memory_space<vmem>>, vector<8x384xbf16>,
      %c0_31 = arith.constant 0 : index
      %c0_32 = arith.constant 0 : index
      %c0_33 = arith.constant 0 : index
      %c20 = arith.constant 20 : index
      %28 = vector.load %arg3[%c0_31, %c0_32, %c0_33, %c20] : memref<1x1x8x422xbf16, #tpu.memory_space<vmem>>, vector<1x1x8x384xbf16>
      %29 = vector.shape_cast %28 : vector<1x1x8x384xbf16> to vector<8x384xbf16>
      %c40 = arith.constant 40 : index
      %c0_34 = arith.constant 0 : index
      %30 = vector.load %arg7[%c40, %c0_34] : memref<72x384xbf16, #tpu.memory_space<vmem>>, vector<8x384xbf16>
      tpu.vector_store %arg7[%c40, %c0_34], %29 {strides = array<i32>} : memref<72x384xbf16, #tpu.memory_space<vmem>>, vector<8x384xbf16>,
      %c0_35 = arith.constant 0 : index
      %c0_36 = arith.constant 0 : index
      %c0_37 = arith.constant 0 : index
      %c36 = arith.constant 36 : index
      %31 = vector.load %arg3[%c0_35, %c0_36, %c0_37, %c36] : memref<1x1x8x422xbf16, #tpu.memory_space<vmem>>, vector<1x1x8x384xbf16>
      %32 = vector.shape_cast %31 : vector<1x1x8x384xbf16> to vector<8x384xbf16>
      %c48 = arith.constant 48 : index
      %c0_38 = arith.constant 0 : index
      %33 = vector.load %arg7[%c48, %c0_38] : memref<72x384xbf16, #tpu.memory_space<vmem>>, vector<8x384xbf16>
      tpu.vector_store %arg7[%c48, %c0_38], %32 {strides = array<i32>} : memref<72x384xbf16, #tpu.memory_space<vmem>>, vector<8x384xbf16>,
      %c0_39 = arith.constant 0 : index
      %c0_40 = arith.constant 0 : index
      %c0_41 = arith.constant 0 : index
      %c37 = arith.constant 37 : index
      %34 = vector.load %arg3[%c0_39, %c0_40, %c0_41, %c37] : memref<1x1x8x422xbf16, #tpu.memory_space<vmem>>, vector<1x1x8x384xbf16>
      %35 = vector.shape_cast %34 : vector<1x1x8x384xbf16> to vector<8x384xbf16>
      %c56 = arith.constant 56 : index
      %c0_42 = arith.constant 0 : index
      %36 = vector.load %arg7[%c56, %c0_42] : memref<72x384xbf16, #tpu.memory_space<vmem>>, vector<8x384xbf16>
      tpu.vector_store %arg7[%c56, %c0_42], %35 {strides = array<i32>} : memref<72x384xbf16, #tpu.memory_space<vmem>>, vector<8x384xbf16>,
      %c0_43 = arith.constant 0 : index
      %c0_44 = arith.constant 0 : index
      %c0_45 = arith.constant 0 : index
      %c38 = arith.constant 38 : index
      %37 = vector.load %arg3[%c0_43, %c0_44, %c0_45, %c38] : memref<1x1x8x422xbf16, #tpu.memory_space<vmem>>, vector<1x1x8x384xbf16>
      %38 = vector.shape_cast %37 : vector<1x1x8x384xbf16> to vector<8x384xbf16>
      %c64 = arith.constant 64 : index
      %c0_46 = arith.constant 0 : index
      %39 = vector.load %arg7[%c64, %c0_46] : memref<72x384xbf16, #tpu.memory_space<vmem>>, vector<8x384xbf16>
      tpu.vector_store %arg7[%c64, %c0_46], %38 {strides = array<i32>} : memref<72x384xbf16, #tpu.memory_space<vmem>>, vector<8x384xbf16>,
    } else {
    }
    %c0 = arith.constant 0 : index
    %c0_1 = arith.constant 0 : index
    %3 = vector.load %arg4[%c0, %c0_1] : memref<16x72xbf16, #tpu.memory_space<vmem>>, vector<16x72xbf16>
    %c0_2 = arith.constant 0 : index
    %c0_3 = arith.constant 0 : index
    %4 = vector.load %arg7[%c0_2, %c0_3] : memref<72x384xbf16, #tpu.memory_space<vmem>>, vector<72x384xbf16>
    %cst = arith.constant dense<0.000000e+00> : vector<16x384xf32>
    %5 = tpu.matmul %3, %4, %cst {dimension_numbers = #tpu.dot_dimension_numbers<[1], [0], [0], [1], [0, 0, 1, 1], [], []>} : vector<16x72xbf16>, vector<72x384xbf16>, vector<16x384xf32> -> vector<16x384xf32>
    %c0_4 = arith.constant 0 : index
    %c0_5 = arith.constant 0 : index
    %6 = vector.load %arg5[%c0_4, %c0_5] : memref<16x1xf32, #tpu.memory_space<vmem>>, vector<16x1xf32>
    %7 = vector.broadcast %6 : vector<16x1xf32> to vector<16x384xf32>
    %8 = arith.addf %5, %7 : vector<16x384xf32>
    %9 = arith.truncf %8 : vector<16x384xf32> to vector<16x384xbf16>
    %c0_6 = arith.constant 0 : index
    %c0_7 = arith.constant 0 : index
    %c0_8 = arith.constant 0 : index
    %10 = vector.load %arg6[%c0_6, %c0_7, %c0_8] : memref<1x16x384xbf16, #tpu.memory_space<vmem>>, vector<1x16x384xbf16>
    %11 = vector.shape_cast %10 : vector<1x16x384xbf16> to vector<16x384xbf16>
    %12 = vector.shape_cast %9 : vector<16x384xbf16> to vector<1x16x384xbf16>
    tpu.vector_store %arg6[%c0_6, %c0_7, %c0_8], %12 {strides = array<i32>} : memref<1x16x384xbf16, #tpu.memory_space<vmem>>, vector<1x16x384xbf16>,
    return
  }
  func.func @transform_0(%arg0: i32, %arg1: i32, %arg2: i32) -> (i32, i32, i32, i32) {
    %c0_i32 = arith.constant 0 : i32
    %c0_i32_0 = arith.constant 0 : i32
    %c0_i32_1 = arith.constant 0 : i32
    return %arg0, %arg1, %c0_i32, %c0_i32_0 : i32, i32, i32, i32
  }
  func.func @transform_1(%arg0: i32, %arg1: i32, %arg2: i32) -> (i32, i32) {
    %c0_i32 = arith.constant 0 : i32
    %c0_i32_0 = arith.constant 0 : i32
    return %arg2, %c0_i32 : i32, i32
  }
  func.func @transform_2(%arg0: i32, %arg1: i32, %arg2: i32) -> (i32, i32) {
    %c0_i32 = arith.constant 0 : i32
    %c0_i32_0 = arith.constant 0 : i32
    return %arg2, %c0_i32 : i32, i32
  }
  func.func @transform_3(%arg0: i32, %arg1: i32, %arg2: i32) -> (i32, i32, i32) {
    %c0_i32 = arith.constant 0 : i32
    return %arg0, %arg2, %arg1 : i32, i32, i32
  }
}

</mosaic_0001>

<bundles_post_ra>
// kernel: tpu_custom_call.1
= control target key start
LH: loop header
LB: loop body
LE: loop exit
PB: predicated region body
PF: predicated region fallthrough
CT: control target
= control target key end

     0   :  { %8 = vsyncpa [#allocation4], 0  ;;  %s1295_s0 = inlined_call_operand.hbm [shape: bf16[2,1,8,422], index: 0, kind: input, shape index: {}]   ;;  %s1296_s1 = inlined_call_operand.vmem [shape: bf16[16,72], index: 1, kind: input, shape index: {}]   ;;  %s1297_s2 = inlined_call_operand.vmem [shape: f32[16,1], index: 2, kind: input, shape index: {}]   ;;  %s1298_s3 = inlined_call_operand.hbm [shape: bf16[2,16,384], index: 3, kind: output, shape index: {}]  }
   0x1   :  { %10 = vsyncpa [#allocation4 + $0x1], 0 }
   0x2   :  { %11 = vsyncpa [#allocation5], 0 }
   0x3   :  { %13 = vsyncpa [#allocation5 + $0x1], 0  ;;  %s1082_s12 = smov 0   ;;  %s1084_s13 = smov 0  }
   0x4   :  { %s1086_s14 = smov 0   ;;  %s1088_s15 = smov 0  }
   0x5   :  { %s1090_s16 = smov 0   ;;  %s1092_s17 = smov 0  }
   0x6 LB: > { %s786_s18 = sadd.s32 4294967295, %s1045_s17   ;;  %s787_s19 = sadd.s32 4294967294, %s1045_s17   ;;  %s1045_s17 = sphi %s1092_s17, %s19_s17   ;;  %s1041_s16 = sphi %s1090_s16, %s1314_s16   ;;  %s1037_s15 = sphi %s1088_s15, %s1313_s15   ;;  %s1033_s14 = sphi %s1086_s14, %s1312_s14   ;;  %s1029_s13 = sphi %s1084_s13, %s1311_s13   ;;  %s1025_s12 = sphi %s1082_s12, %s1310_s12  }
   0x7   : > { %s38_s20 = sadd.s32 1, %s1041_s16  ;;  %s47_s21 = sadd.s32 1, %s1033_s14 }
   0x8   : > { %p40_p0 = scmp.ge.s32.totalorder %s38_s20, 2  ;;  %p54_p1 = scmp.ne.s32.totalorder %s1033_s14, %s1029_s13 }
   0x9   : > { %p55_p2 = scmp.eq.s32.totalorder %s1045_s17, 0  ;;  %p60_p3 = scmp.ne.s32.totalorder %s1029_s13, %s1025_s12 }
   0xa   : > { %s1316_s20 = smov (%p40_p0, %s38_s20), 0  ;;  %p61_p5 = scmp.eq.s32.totalorder %s786_s18, 0 }
   0xb   : > { %p1123_p4 = por %p55_p2, %p54_p1  ;;  %s42_s23 = ssub.s32 %s1041_s16, %s1316_s20 }
   0xc   : > { %p140_p6 = scmp.eq.s32.totalorder %s786_s18, 1  ;;  %p45_p7 = scmp.eq.s32.totalorder %s42_s23, 0 }
   0xd   : > { %p1129_p8 = por %p61_p5, %p60_p3  ;;  %p146_p10 = scmp.eq.s32.totalorder %s787_s19, 1 }
   0xe   : > { %p1133_p9 = por %p140_p6, %p54_p1  ;;  %p862_p13 = scmp.lt.s32.totalorder %s1045_s17, 2 }
   0xf   : > { %s1138_s26 = scalar_select %p45_p7, %s1033_s14, %s47_s21  }
  0x10   : > { %s1302_s25 = scalar_select %p1133_p9, 1, 0 }
  0x11   : > { %p1140_p11 = por %p146_p10, %p60_p3  ;;  %s184_s28 = sand.u32 1, %s1033_s14  }
  0x12   : > { %s792_s29 = sshll.u32 %s184_s28, 4  ;;  %s823_s30 = sshll.u32 %s1041_s16, 8 }
  0x13   : > { %s1303_s27 = scalar_select %p1140_p11, 1, 0 }
  0x14   : > { %s1151_s6 = scalar_lea.hbm %s1295_s0, %s823_s30  ;;  %s188_s7 = scalar_lea.vmem [#allocation3], %s792_s29 }
  0x15   : > { %s198_s8 = sshll.u32 %s188_s7, 4  ;;  %p1157_p0 = pnand %p862_p13, %p1123_p4  ;;  %s1153_s8 = int_to_ptr.vmem [resolvable:$true] %s198_s8 }
  0x16   : > { %s185_s10 = scalar_lea.sflag [#allocation4], %s184_s28  ;;  %s933_s11 = scalar_lea.hbm %s1151_s6, 256 }
  0x17   : > { %p934_p3 = scmp.ne.s32.totalorder %s1151_s6, %s933_s11  ;;  %p935_p5 = pneg %p1157_p0 }
  0x18   : > { %s938_s21 = scalar_lea.hbm %s1295_s0, 512  ;;  %p939_p4 = scmp.lt.u32.totalorder %s1151_s6, %s1295_s0 }
  0x19   : > { %p936_p6 = pnand %p935_p5, %p934_p3  ;;  %p940_p10 = scmp.lt.u32.totalorder %s938_s21, %s933_s11 }
  0x1a   : > { %p942_p12 = scmp.lt.u32.totalorder %s933_s11, %s1151_s6 }
  0x1b   : > { %p937_p7 = pneg %p936_p6  ;;  %p941_p13 = por %p940_p10, %p939_p4 }
  0x1d   : > { %p943_p1 = por %p942_p12, %p941_p13 }
  0x1f   : > { %p944_p2 = pnand %p943_p1, %p937_p7 }
  0x21   : > { %947 = shalt.err (!%p944_p2)
}
  0x22   : > { %s948_s28 = scalar_lea.vmem %s1153_s8, 256  ;;  %s1047_s29 = smov [#allocation3]  }
  0x23   : > { %p949_p3 = scmp.ne.s32.totalorder %s1153_s8, %s948_s28  ;;  %s953_s30 = sshll.u32 %s1047_s29, 4  ;;  %s954_s30 = int_to_ptr.vmem [resolvable:$false] %s953_s30 }
  0x24   : > { %s955_s4 = scalar_lea.vmem %s954_s30, 512  ;;  %p956_p9 = scmp.lt.s32.totalorder %s1153_s8, %s954_s30 }
  0x25   : > { %p951_p6 = pnand %p949_p3, %p935_p5  ;;  %p957_p4 = scmp.lt.s32.totalorder %s955_s4, %s948_s28 }
  0x27   : > { %p952_p11 = pneg %p951_p6  ;;  %p958_p10 = por %p957_p4, %p956_p9 }
  0x29   : > { %p959_p12 = pnand %p958_p10, %p952_p11 }
  0x2b   : > { %962 = shalt.err (!%p959_p12)
}
  0x2c   : > { %857 = dma.hbm_to_vmem [thread:$0]  (!%p1157_p0), %s1151_s6, 256, %s1153_s8, %s185_s10  }
  0x2d   : > { %p1305_p1 = scmp.lt.s32.totalorder %s1045_s17, 3  ;;  %p1306_p2 = scmp.ge.s32.totalorder %s1045_s17, 1 }
  0x2f   : > { %p204_p5 = pnand %p1306_p2, %p1305_p1 }
  0x30   : > { %s1193_s5 = sand.u32 (!%p204_p5), 1, %s1029_s13  }
  0x31   : > { %207 = sbr.rel (%p204_p5) target bundleno = 449 (0x1c1), region = 32  ;;  %s796_s7 = sshll.u32 (!%p204_p5), %s1193_s5, 4 }
  0x32   : > { %s210_s11 = scalar_lea.sflag (!%p204_p5), [#allocation4], %s1193_s5  ;;  %s213_s18 = scalar_lea.vmem (!%p204_p5), [#allocation3], %s796_s7 }
  0x38   : > { %1016 = dma.done.wait (%p1129_p8), %s210_s11, 256  }
  0x39   : > { %1018 = vsyncadd (%p1129_p8), %s210_s11, 4294967040  ;;  %v1201_v0 = vld [vmem:[%s213_s18] sm:$0xff]  ;;  %v266_v1 = vld [vmem:[%s213_s18 + $0x8] sm:$0xf]  ;;  %s1048_s6 = smov 126   ;;  %s1049_s8 = smov 127  }
  0x3a   : > { %292 = vrot.lane.b32.xlu1 %v1201_v0, %s1048_s6  ;;  %273 = vrot.lane.b32.xlu0 %v1201_v0, %s1049_s8  ;;  %268 = vst [vmem:[#allocation2 + $0x8] sm:$0xf] %v266_v1  ;;  %v289_v2 = vld [vmem:[%s213_s18 + $0x8] sm:$0xff]  ;;  %v1050_v3 = vmov 0.0   ;;  %s1051_s9 = smov 110   ;;  %s1052_s24 = smov 109  }
  0x3b   : > { %834 = vmatprep.subr.bf16.mxu1 %v1050_v3  ;;  %s1053_s10 = smov 108   ;;  %s1054_s19 = smov 92   ;;  %v1056_v4 = vmov 0   ;;  %vm1058_vm0 = vmmov 0   ;;  %v434_v5 = vld [vmem:[%s1297_s2] sm:$0xff]  ;;  %v435_v6 = vld [vmem:[%s1297_s2 + $0x8] sm:$0xff] }
  0x3c   : > { %s1055_s21 = smov 91   ;;  %569 = vmatprep.mubr.bf16.mxu0 %v1056_v4  ;;  %925 = vset.pattern.permute.xlu0 %v1056_v4  ;;  %s1057_s22 = smov 90   ;;  %vm279_vm1 = vcmask 1043456   ;;  %vm299_vm2 = vcmask 1031168   ;;  %vm281_vm3 = vcmask 1039360   ;;  %vm317_vm4 = vcmask 900096  }
  0x3d   : > { %926 = vset.pattern.permute.xlu1 %v1056_v4  ;;  %844 = vmatprep.mubr.msk.bf16.mxu1 %vm1058_vm0, %v1050_v3  ;;  %vm335_vm5 = vcmask 891904   ;;  %vm353_vm6 = vcmask 883712   ;;  %vm371_vm7 = vcmask 752640   ;;  %vm389_vm8 = vcmask 744448   ;;  %s848_s11 = smul.u32 24, %s1193_s5  ;;  %p1307_p9 = scmp.ne.s32.totalorder %s1302_s25, 0 }
  0x3e   : > { %294 = vrot.lane.b32.xlu1 %v289_v2, %s1048_s6  ;;  %275 = vrot.lane.b32.xlu0 %v289_v2, %s1049_s8  ;;  %vm407_vm9 = vcmask 736256   ;;  %vm523_vm10 = vcmask 588800   ;;  %s849_s8 = smul.u32 384, %s1037_s15  ;;  %s646_s15 = scalar_lea.sflag [#allocation5], %s1193_s5 }
  0x3f   : > { %s245_s18 = scalar_lea.vmem [#allocation6], %s848_s11 }
  0x40   : > { %s664_s6 = sshll.u32 %s245_s18, 4  ;;  %s1241_s6 = int_to_ptr.vmem [resolvable:$true] %s664_s6 }
  0x42   : > { %312 = vrot.lane.b32.xlu1 %v289_v2, %s1051_s9  ;;  %310 = vrot.lane.b32.xlu0 %v1201_v0, %s1051_s9 }
  0x46   : > { %330 = vrot.lane.b32.xlu1 %v289_v2, %s1052_s24  ;;  %328 = vrot.lane.b32.xlu0 %v1201_v0, %s1052_s24 }
  0x4a   : > { %348 = vrot.lane.b32.xlu1 %v289_v2, %s1053_s10  ;;  %346 = vrot.lane.b32.xlu0 %v1201_v0, %s1053_s10  ;;  %s1246_s10 = scalar_lea.hbm %s1298_s3, %s849_s8 }
  0x4e   : > { %366 = vrot.lane.b32.xlu1 %v289_v2, %s1054_s19  ;;  %364 = vrot.lane.b32.xlu0 %v1201_v0, %s1054_s19  ;;  %s963_s19 = scalar_lea.vmem %s1241_s6, 384 }
  0x4f   : > { %p964_p8 = scmp.ne.s32.totalorder %s1241_s6, %s963_s19 }
  0x51   : > { %p965_p11 = pnand %p964_p8, %p1307_p9 }
  0x52   : > { %384 = vrot.lane.b32.xlu1 %v289_v2, %s1055_s21  ;;  %382 = vrot.lane.b32.xlu0 %v1201_v0, %s1055_s21  ;;  %s1059_s21 = smov [#allocation6]  }
  0x53   : > { %p966_p0 = pneg %p965_p11 }
  0x56   : > { %402 = vrot.lane.b32.xlu1 %v289_v2, %s1057_s22  ;;  %400 = vrot.lane.b32.xlu0 %v1201_v0, %s1057_s22  ;;  %s967_s22 = sshll.u32 %s1059_s21, 4  ;;  %s968_s22 = int_to_ptr.vmem [resolvable:$false] %s967_s22 }
  0x57   : > { %s969_s23 = scalar_lea.vmem %s968_s22, 768  ;;  %p970_p7 = scmp.lt.s32.totalorder %s1241_s6, %s968_s22 }
  0x58   : > { %p971_p13 = scmp.lt.s32.totalorder %s969_s23, %s963_s19 }
  0x5a   : > { %438 = vperm.xlu0 %925, %v434_v5   ;;  %443 = vperm.xlu1 %926, %v435_v6   ;;  %p972_p3 = por %p971_p13, %p970_p7 }
  0x5c   : > { %p973_p6 = pnand %p972_p3, %p966_p0 }
  0xac   : > { %v293_v7 = vpop.permute.xlu1 %292  ;;  %v274_v8 = vpop.permute.xlu0 %273 }
  0xad   : > { %v277_v9 = vrot.slane %v274_v8, 4  ;;  %v296_v12 = vrot.slane %v293_v7, 4 }
  0xb0   : > { %v295_v10 = vpop.permute.xlu1 %294  ;;  %v276_v11 = vpop.permute.xlu0 %275 }
  0xb1   : > { %v297_v13 = vrot.slane %v295_v10, 4  ;;  %v278_v14 = vrot.slane %v276_v11, 4 }
  0xb3   : > { %v298_v15 = vsel %vm279_vm1, %v296_v12, %v297_v13  ;;  %v301_v16 = vsel %vm299_vm2, %v295_v10, %v297_v13  ;;  %v280_v17 = vsel %vm279_vm1, %v277_v9, %v278_v14  ;;  %v283_v18 = vsel %vm281_vm3, %v276_v11, %v278_v14 }
  0xb4   : > { %v300_v19 = vsel %vm299_vm2, %v293_v7, %v298_v15  ;;  %305 = vst [vmem:[#allocation2 + $0x20] sm:$0xf] %v301_v16  ;;  %v282_v20 = vsel %vm281_vm3, %v274_v8, %v280_v17  ;;  %287 = vst [vmem:[#allocation2 + $0x14] sm:$0xf] %v283_v18  ;;  %v313_v21 = vpop.permute.xlu1 %312  ;;  %v311_v22 = vpop.permute.xlu0 %310  ;;  %v932_v15 = vld [vmem:[%s1296_s1] sm:$0xff]  }
  0xb5   : > { %v315_v23 = vrot.slane %v313_v21, 4  ;;  %v314_v24 = vrot.slane %v311_v22, 4  ;;  %v799_v25 = vcombine.high %v1201_v0, %v282_v20  ;;  %v798_v26 = vcombine.low %v1201_v0, %v282_v20 }
  0xb7   : > { %v319_v27 = vsel %vm317_vm4, %v313_v21, %v315_v23  ;;  %v316_v28 = vsel %vm279_vm1, %v314_v24, %v315_v23  ;;  %537 = vmatprep.subr.bf16.mxu0 %v799_v25 }
  0xb8   : > { %323 = vst [vmem:[#allocation2 + $0x2c] sm:$0xf] %v319_v27  ;;  %v318_v29 = vsel %vm317_vm4, %v311_v22, %v316_v28  ;;  %v331_v30 = vpop.permute.xlu1 %330  ;;  %v329_v31 = vpop.permute.xlu0 %328  ;;  %538 = vmatpush1.bf16.msra.mxu0 %v798_v26 }
  0xb9   : > { %v333_v32 = vrot.slane %v331_v30, 4  ;;  %v332_v33 = vrot.slane %v329_v31, 4  ;;  %v802_v34 = vcombine.high %v300_v19, %v318_v29  ;;  %v801_v35 = vcombine.low %v300_v19, %v318_v29 }
  0xbb   : > { %v337_v36 = vsel %vm335_vm5, %v331_v30, %v333_v32  ;;  %v334_v37 = vsel %vm279_vm1, %v332_v33, %v333_v32  ;;  %v927_v38 = vld [vmem:[#allocation2 + $0x8] ss:$12 sps:$4 sm:$0xff]   ;;  %539 = vmatprep.subr.bf16.mxu0 %v802_v34 }
  0xbc   : > { %341 = vst [vmem:[#allocation2 + $0x38] sm:$0xf] %v337_v36  ;;  %v336_v39 = vsel %vm335_vm5, %v329_v31, %v334_v37  ;;  %v349_v40 = vpop.permute.xlu1 %348  ;;  %v347_v41 = vpop.permute.xlu0 %346  ;;  %540 = vmatpush1.bf16.msra.mxu0 %v801_v35  ;;  %835 = vmatpush3.bf16.msra.mxu1 %v927_v38 }
  0xbd   : > { %v351_v42 = vrot.slane %v349_v40, 4  ;;  %v350_v43 = vrot.slane %v347_v41, 4  ;;  %836 = vmatprep.subr.bf16.mxu1 %v1050_v3 }
  0xbf   : > { %v355_v44 = vsel %vm353_vm6, %v349_v40, %v351_v42  ;;  %v352_v45 = vsel %vm279_vm1, %v350_v43, %v351_v42  ;;  %v928_v46 = vld [vmem:[#allocation2 + $0x20] ss:$12 sps:$4 sm:$0xff]  }
  0xc0   : > { %359 = vst [vmem:[#allocation2 + $0x44] sm:$0xf] %v355_v44  ;;  %v354_v47 = vsel %vm353_vm6, %v347_v41, %v352_v45  ;;  %v367_v48 = vpop.permute.xlu1 %366  ;;  %v365_v49 = vpop.permute.xlu0 %364  ;;  %837 = vmatpush3.bf16.msra.mxu1 %v928_v46 }
  0xc1   : > { %v369_v50 = vrot.slane %v367_v48, 4  ;;  %v368_v51 = vrot.slane %v365_v49, 4  ;;  %v805_v52 = vcombine.high %v336_v39, %v354_v47  ;;  %v804_v53 = vcombine.low %v336_v39, %v354_v47  ;;  %838 = vmatprep.subr.bf16.mxu1 %v1050_v3 }
  0xc3   : > { %v373_v54 = vsel %vm371_vm7, %v367_v48, %v369_v50  ;;  %v370_v55 = vsel %vm279_vm1, %v368_v51, %v369_v50  ;;  %541 = vmatprep.subr.bf16.mxu0 %v805_v52 }
  0xc4   : > { %377 = vst [vmem:[#allocation2 + $0x50] sm:$0xf] %v373_v54  ;;  %v372_v56 = vsel %vm371_vm7, %v365_v49, %v370_v55  ;;  %v385_v57 = vpop.permute.xlu1 %384  ;;  %v383_v58 = vpop.permute.xlu0 %382  ;;  %542 = vmatpush1.bf16.msra.mxu0 %v804_v53 }
  0xc5   : > { %v387_v59 = vrot.slane %v385_v57, 4  ;;  %v386_v60 = vrot.slane %v383_v58, 4 }
  0xc7   : > { %v391_v61 = vsel %vm389_vm8, %v385_v57, %v387_v59  ;;  %v388_v62 = vsel %vm279_vm1, %v386_v60, %v387_v59  ;;  %v929_v63 = vld [vmem:[#allocation2 + $0x38] ss:$12 sps:$4 sm:$0xff]  }
  0xc8   : > { %395 = vst [vmem:[#allocation2 + $0x5c] sm:$0xf] %v391_v61  ;;  %v390_v0 = vsel %vm389_vm8, %v383_v58, %v388_v62  ;;  %v403_v1 = vpop.permute.xlu1 %402  ;;  %v401_v2 = vpop.permute.xlu0 %400  ;;  %839 = vmatpush3.bf16.msra.mxu1 %v929_v63 }
  0xc9   : > { %v405_v4 = vrot.slane %v403_v1, 4  ;;  %v404_v5 = vrot.slane %v401_v2, 4  ;;  %v808_v6 = vcombine.high %v372_v56, %v390_v0  ;;  %v807_v7 = vcombine.low %v372_v56, %v390_v0  ;;  %840 = vmatprep.subr.bf16.mxu1 %v1050_v3 }
  0xcb   : > { %v409_v8 = vsel %vm407_vm9, %v403_v1, %v405_v4  ;;  %v406_v9 = vsel %vm279_vm1, %v404_v5, %v405_v4  ;;  %543 = vmatprep.subr.bf16.mxu0 %v808_v6 }
  0xcc   : > { %413 = vst [vmem:[#allocation2 + $0x68] sm:$0xf] %v409_v8  ;;  %v408_v10 = vsel %vm407_vm9, %v401_v2, %v406_v9  ;;  %544 = vmatpush1.bf16.msra.mxu0 %v807_v7 }
  0xcd   : > { %v811_v11 = vcombine.high %v408_v10, %v408_v10  ;;  %v810_v12 = vcombine.low %v408_v10, %v408_v10 }
  0xcf   : > { %v930_v13 = vld [vmem:[#allocation2 + $0x50] ss:$12 sps:$4 sm:$0xff]   ;;  %813 = vmatprep.subr.msk.bf16.mxu0 %vm279_vm1, %v811_v11  ;;  %v529_v14 = vsel %vm279_vm1, %v810_v12, 0 }
  0xd0   : > { %546 = vmatpush1.bf16.msra.mxu0 %v529_v14  ;;  %841 = vmatpush3.bf16.msra.mxu1 %v930_v13 }
  0xd1   : > { %842 = vmatprep.subr.bf16.mxu1 %v1050_v3 }
  0xd3   : > { %v931_v16 = vld [vmem:[#allocation2 + $0x68] ss:$0 sps:$4 sm:$0xff]   ;;  %814 = vmatmul.mubr.msk.bf16.vlgmr.msra.gmra.mrb[0].mxu0 %vm523_vm10, %v932_v15 }
  0xd4   : > { %v535_v17 = vsel %vm279_vm1, %v931_v16, 0 }
  0xd5   : > { %843 = vmatpush3.bf16.msra.mxu1 %v535_v17 }
  0xd8   : > { %845 = vmatmul.mubr.msk.bf16.vlgmr.msra.gmra.mrb[0].mxu1 %vm523_vm10, %v932_v15 }
  0xd9   : > { %v439_v18 = vpop.permute.xlu0 %438  ;;  %v444_v20 = vpop.permute.xlu1 %443 }
 0x1a6   : > { %v571_v19 = vpop.f32.mrb[0].mxu0 }
 0x1a7   : > { %v572_v21 = vadd.f32 %v571_v19, %v439_v18  ;;  %v573_v22 = vpop.f32.mrb[1].mxu0 }
 0x1a8   : > { %v574_v23 = vadd.f32 %v573_v22, %v439_v18  ;;  %v575_v24 = vpop.f32.mrb[2].mxu0 }
 0x1a9   : > { %v576_v25 = vadd.f32 %v575_v24, %v444_v20  ;;  %v577_v26 = vpop.f32.mrb[3].mxu0 }
 0x1aa   : > { %v824_v27 = vpack.c.bf16 %v574_v23, %v572_v21  ;;  %v578_v28 = vadd.f32 %v577_v26, %v444_v20 }
 0x1ab   : > { %v614_v3 = vpop.f32.mrb[0].mxu1 }
 0x1ac   : > { %641 = vst [vmem:[%s245_s18] sm:$0xff] %v824_v27  ;;  %v826_v29 = vpack.c.bf16 %v578_v28, %v576_v25  ;;  %v615_v30 = vadd.f32 %v614_v3, %v439_v18  ;;  %v846_v31 = vpop.f32.mrb[1].mxu1 }
 0x1ad   : > { %v617_v32 = vpop.f32.mrb[2].mxu1 }
 0x1ae   : > { %643 = vst [vmem:[%s245_s18 + $0xc] sm:$0xff] %v826_v29  ;;  %v825_v33 = vpack.c.bf16 %v615_v30, %v615_v30  ;;  %v618_v34 = vadd.f32 %v617_v32, %v444_v20  ;;  %v847_v35 = vpop.f32.mrb[3].mxu1 }
 0x1b0   : > { %642 = vst [vmem:[%s245_s18 + $0x8] sm:$0xf] %v825_v33  ;;  %v827_v36 = vpack.c.bf16 %v618_v34, %v618_v34 }
 0x1b2   : > { %644 = vst [vmem:[%s245_s18 + $0x14] sm:$0xf] %v827_v36 }
 0x1b3   : > { %976 = shalt.err (!%p973_p6)
}
 0x1b4   : > { %s977_s28 = scalar_lea.hbm %s1246_s10, 384  ;;  %s981_s4 = scalar_lea.hbm %s1298_s3, 768 }
 0x1b5   : > { %p978_p4 = scmp.ne.s32.totalorder %s1246_s10, %s977_s28  ;;  %p982_p1 = scmp.lt.u32.totalorder %s1246_s10, %s1298_s3 }
 0x1b6   : > { %p983_p2 = scmp.lt.u32.totalorder %s981_s4, %s977_s28  ;;  %p985_p8 = scmp.lt.u32.totalorder %s977_s28, %s1246_s10 }
 0x1b7   : > { %p979_p10 = pnand %p978_p4, %p1307_p9 }
 0x1b8   : > { %p984_p5 = por %p983_p2, %p982_p1 }
 0x1b9   : > { %p980_p12 = pneg %p979_p10 }
 0x1ba   : > { %p986_p11 = por %p985_p8, %p984_p5 }
 0x1bc   : > { %p987_p0 = pnand %p986_p11, %p980_p12 }
 0x1be   : > { %990 = shalt.err (!%p987_p0)
}
 0x1bf   : > { %s1060_s18 = smov 192   ;;  %s1061_s8 = smov 12  }
 0x1c0   : > { %852 = dma.vmem_to_hbm [thread:$0]  (%p1307_p9), %s1241_s6, 384, %s1246_s10, %s646_s15, %s1060_s18, %s1060_s18, %s1061_s8  }
 0x1c1 PF: > { %s679_s9 = sand.u32 1, %s1025_s12   ;;  %p1308_p7 = scmp.ne.s32.totalorder %s1303_s27, 0 }
 0x1c2   : > { %p1309_p13 = scmp.ge.s32.totalorder %s1045_s17, 2  ;;  %s680_s24 = scalar_lea.sflag [#allocation5], %s679_s9 }
 0x1c4   : > { %p859_p3 = pnand %p1309_p13, %p1308_p7 }
 0x1c6   : > { %1020 = dma.done.wait (!%p859_p3), %s680_s24, 384  }
 0x1c7   : > { %1022 = vsyncadd (!%p859_p3), %s680_s24, 4294966912  ;;  %s19_s17 = sadd.s32 1, %s1045_s17   ;;  %s1310_s12 = smov %s1029_s13 }
 0x1c8   : > { %p16_p6 = scmp.ge.s32.totalorder %s19_s17, 4   ;;  %s1311_s13 = smov %s1033_s14 }
 0x1c9   : > { %s1312_s14 = smov %s1138_s26  ;;  %s1313_s15 = smov %s1041_s16 }
 0x1ca   : > { %s1314_s16 = smov %s1316_s20  ;;  %18 = sbr.rel (!%p16_p6) target bundleno = 6 (0x6), region = 87 }
 0x1d1   :  { %685 = vsyncpa [#allocation4], 1 }
 0x1d2   :  { %687 = vsyncpa [#allocation4 + $0x1], 1 }
 0x1d3   :  { %688 = vsyncpa [#allocation5], 1 }
 0x1d4   :  { %690 = vsyncpa [#allocation5 + $0x1], 1 }

</bundles_post_ra>
